<compile_context>
chip_gen: v7x
topology: tpu7x:2x2x1
jax: 0.10.0
libtpu: 0.0.40
codegen_flags: <defaults>
</compile_context>

<pallas_src>
import math

import jax
import jax.numpy as jnp
from jax.experimental import pallas as pl
from jax.experimental.pallas import tpu as pltpu


def _patch_merging_kernel(x_ref, w_ref, b_ref, o_ref):
    """Fused 2x2 gather tail + LayerNorm(4C) + Linear(4C -> 2C, no bias).

    x_ref: (tbh, 2, Wp, 2C)  tokens laid out as (b*hp, h_off, wp, w_off*C + c)
    w_ref: (2, 2C, 2C)       bf16 reduction weight, gamma folded in, one slab per h_off
    b_ref: (1, 2C)           f32, beta @ W (LayerNorm bias pushed through the Linear)
    o_ref: (tbh*Wp, 2C)
    """
    tbh, _, wp, k = x_ref.shape          # k == 2C
    rows = tbh * wp
    n_inv = 1.0 / (2 * k)                # 1 / (4C)

    # Even-h / odd-h halves of every output token's 4C channel vector.
    xe = x_ref[:, 0, :, :].reshape(rows, k).astype(jnp.float32)   # channels [x0 | x2]
    xo = x_ref[:, 1, :, :].reshape(rows, k).astype(jnp.float32)   # channels [x1 | x3]

    # LayerNorm statistics over the full 4C vector (split across the two halves).
    mean = (jnp.sum(xe, axis=-1, keepdims=True)
            + jnp.sum(xo, axis=-1, keepdims=True)) * n_inv
    ce = xe - mean
    co = xo - mean
    var = (jnp.sum(ce * ce, axis=-1, keepdims=True)
           + jnp.sum(co * co, axis=-1, keepdims=True)) * n_inv
    inv = jax.lax.rsqrt(var + 1e-5)      # EUP rsqrt (free slot vs VALU)

    ne = (ce * inv).astype(jnp.bfloat16)
    no = (co * inv).astype(jnp.bfloat16)

    # Two half-K matmuls on the MXU (bf16 in, f32 accumulate), plus the folded bias.
    y = (jnp.dot(ne, w_ref[0], preferred_element_type=jnp.float32)
         + jnp.dot(no, w_ref[1], preferred_element_type=jnp.float32)
         + b_ref[...])
    o_ref[...] = y.astype(o_ref.dtype)


def patch_merging(x, input_resolution, gamma, beta, w_reduction, *,
                  target_block_rows=512,
                  vmem_budget_bytes=20 * 1024 * 1024):
    """x: (B, H*W, C). gamma/beta: (4C,). w_reduction: (4C, 2C) = nn.Linear weight^T.

    Returns (B, (H/2)*(W/2), 2*C), matching the PyTorch PatchMerging.forward.
    """
    H, W = input_resolution
    B, L, C = x.shape
    assert L == H * W, "input feature has wrong size"
    assert H % 2 == 0 and W % 2 == 0, f"x size ({H}*{W}) are not even."

    Hp, Wp = H // 2, W // 2
    BHp = B * Hp
    M = BHp * Wp
    C2 = 2 * C
    C4 = 4 * C

    # --- Free contiguous reshape (no HBM transpose / extra traffic). ---
    # (B, H, W, C) == (B*Hp, 2, Wp, 2, C) -> (B*Hp, h_off, Wp, w_off*C + c)
    x4 = x.reshape(BHp, 2, Wp, C2)

    # --- Fold LayerNorm affine into the (tiny) reduction weight and permute its rows
    #     to the kernel's natural channel order ([x0|x2] for even-h, [x1|x3] for odd-h).
    #     Canonical torch.cat([x0,x1,x2,x3]) row blocks are indexed by (w_off, h_off).
    w_g = w_reduction.astype(jnp.float32) * gamma.astype(jnp.float32)[:, None]
    w_r = w_g.reshape(2, 2, C, C2)                  # (w_off, h_off, c, out)
    w_even = w_r[:, 0].reshape(C2, C2)              # rows [x0 | x2]
    w_odd = w_r[:, 1].reshape(C2, C2)               # rows [x1 | x3]
    w_k = jnp.stack([w_even, w_odd]).astype(jnp.bfloat16)       # (2, 2C, 2C)
    bias = (beta.astype(jnp.float32) @ w_reduction.astype(jnp.float32)).reshape(1, C2)

    # --- Row-tile (tbh) selection: ~target_block_rows token rows per grid step,
    #     at least 2 grid steps (pipelining / megacore), shrunk to a VMEM budget.
    itemsize = x.dtype.itemsize
    tbh = max(1, min(BHp, target_block_rows // max(Wp, 1)))
    if BHp > 1 and pl.cdiv(BHp, tbh) < 2:
        tbh = pl.cdiv(BHp, 2)

    def vmem_estimate(t):
        r = t * Wp
        return (2 * r * C4 * itemsize               # double-buffered input tile
                + 2 * r * C2 * itemsize             # double-buffered output tile
                + 2 * 2 * C2 * C2 * 2               # double-buffered bf16 weight
                + 2 * C2 * 4)                       # bias

    while tbh > 1 and vmem_estimate(tbh) > vmem_budget_bytes:
        tbh = max(1, tbh // 2)

    # Output block rows must be a multiple of 8 (sublane) unless the block spans all of M.
    if (tbh * Wp) % 8 != 0 and tbh != BHp:
        step = 8 // math.gcd(Wp, 8)
        tbh_aligned = min(BHp, ((tbh + step - 1) // step) * step)
        tbh = tbh_aligned if (tbh_aligned * Wp) % 8 == 0 else BHp

    rows = tbh * Wp
    grid = (pl.cdiv(BHp, tbh),)

    cost = pl.CostEstimate(
        flops=2 * M * C4 * C2,
        transcendentals=M,                          # one rsqrt per token row
        bytes_accessed=(M * C4 * itemsize + M * C2 * itemsize
                        + 2 * C2 * C2 * 2 + C2 * 4),
    )

    out = pl.pallas_call(
        _patch_merging_kernel,
        out_shape=jax.ShapeDtypeStruct((M, C2), x.dtype),
        grid_spec=pltpu.PrefetchScalarGridSpec(
            num_scalar_prefetch=0,
            grid=grid,
            in_specs=[
                pl.BlockSpec((tbh, 2, Wp, C2), lambda i: (i, 0, 0, 0)),
                pl.BlockSpec((2, C2, C2), lambda i: (0, 0, 0)),   # constant -> DMA'd once
                pl.BlockSpec((1, C2), lambda i: (0, 0)),
            ],
            out_specs=pl.BlockSpec((rows, C2), lambda i: (i, 0)),
        ),
        compiler_params=pltpu.CompilerParams(
            dimension_semantics=("parallel",),
            vmem_limit_bytes=32 * 1024 * 1024,
        ),
        cost_estimate=cost,
    )(x4, w_k, bias)

    return out.reshape(B, Hp * Wp, C2)


def reference(x, input_resolution, gamma, beta, w_reduction):
    """Pure-JAX f32 reference mirroring the PyTorch forward exactly."""
    H, W = input_resolution
    B, L, C = x.shape
    xv = x.reshape(B, H, W, C)
    x0 = xv[:, 0::2, 0::2, :]
    x1 = xv[:, 1::2, 0::2, :]
    x2 = xv[:, 0::2, 1::2, :]
    x3 = xv[:, 1::2, 1::2, :]
    xc = jnp.concatenate([x0, x1, x2, x3], axis=-1).reshape(B, -1, 4 * C)
    mean = jnp.mean(xc, axis=-1, keepdims=True)
    var = jnp.mean((xc - mean) ** 2, axis=-1, keepdims=True)
    xn = (xc - mean) / jnp.sqrt(var + 1e-5) * gamma + beta
    return jnp.einsum("blk,ko->blo", xn, w_reduction)


if __name__ == "__main__":
    B, C = 2, 4
    H, W = 16, 16
    key = jax.random.PRNGKey(0)
    kx, kw, kg, kb = jax.random.split(key, 4)

    x = jax.random.normal(kx, (B, H * W, C), dtype=jnp.float32)

    # nn.Linear(4*dim, 2*dim, bias=False): weight is (2C, 4C); we store its transpose
    # (4C, 2C) so the math is x @ W (same values as the PyTorch module).
    w_reduction = (jax.random.normal(kw, (4 * C, 2 * C), dtype=jnp.float32)
                   * (1.0 / jnp.sqrt(4 * C)))
    # nn.LayerNorm(4*dim) affine params, deterministically perturbed away from identity.
    gamma = 1.0 + 0.1 * jax.random.normal(kg, (4 * C,), dtype=jnp.float32)
    beta = 0.1 * jax.random.normal(kb, (4 * C,), dtype=jnp.float32)

    out = patch_merging(x, (H, W), gamma, beta, w_reduction)
    out = jax.block_until_ready(out)

    ref = reference(x, (H, W), gamma, beta, w_reduction)
    assert out.shape == (B, (H // 2) * (W // 2), 2 * C), out.shape
    max_err = float(jnp.max(jnp.abs(out - ref)))
    # bf16 MXU matmul (f32 accumulation) vs a pure-f32 reference => relaxed tolerance.
    assert jnp.allclose(out, ref, atol=5e-2, rtol=5e-2), max_err
    print("KERNEL_OK")
</pallas_src>

<mosaic_0001>
module attributes {stable_mosaic.version = 11 : i64} {
  func.func @_patch_merging_kernel(%arg0: i32, %arg1: memref<8x2x8x8xf32, #tpu.memory_space<vmem>>, %arg2: memref<2x8x8xbf16, #tpu.memory_space<vmem>>, %arg3: memref<1x8xf32, #tpu.memory_space<vmem>>, %arg4: memref<64x8xf32, #tpu.memory_space<vmem>>) attributes {dimension_semantics = [#tpu.dimension_semantics<parallel>], iteration_bounds = array<i64: 2>, scalar_prefetch = 0 : i64, scratch_operands = 0 : i64, tpu.core_type = #tpu.core_type<tc>, window_params = [{transform_indices = @transform_0, window_bounds = array<i64: 8, 2, 8, 8>}, {pipeline_mode = #tpu.pipeline_mode<synchronous>, transform_indices = @transform_1, window_bounds = array<i64: 2, 8, 8>}, {pipeline_mode = #tpu.pipeline_mode<synchronous>, transform_indices = @transform_2, window_bounds = array<i64: 1, 8>}, {transform_indices = @transform_3, window_bounds = array<i64: 64, 8>}]} {
    %c0 = arith.constant 0 : index
    %c0_0 = arith.constant 0 : index
    %c0_1 = arith.constant 0 : index
    %c0_2 = arith.constant 0 : index
    %0 = vector.load %arg1[%c0, %c0_0, %c0_1, %c0_2] : memref<8x2x8x8xf32, #tpu.memory_space<vmem>>, vector<8x1x8x8xf32>
    %1 = vector.shape_cast %0 : vector<8x1x8x8xf32> to vector<8x8x8xf32>
    %2 = vector.shape_cast %1 : vector<8x8x8xf32> to vector<64x8xf32>
    %c0_3 = arith.constant 0 : index
    %c1 = arith.constant 1 : index
    %c0_4 = arith.constant 0 : index
    %c0_5 = arith.constant 0 : index
    %3 = vector.load %arg1[%c0_3, %c1, %c0_4, %c0_5] : memref<8x2x8x8xf32, #tpu.memory_space<vmem>>, vector<8x1x8x8xf32>
    %4 = vector.shape_cast %3 : vector<8x1x8x8xf32> to vector<8x8x8xf32>
    %5 = vector.shape_cast %4 : vector<8x8x8xf32> to vector<64x8xf32>
    %cst = arith.constant dense<0.000000e+00> : vector<64xf32>
    %6 = vector.multi_reduction <add>, %2, %cst [1] : vector<64x8xf32> to vector<64xf32>
    %7 = vector.shape_cast %6 : vector<64xf32> to vector<64x1xf32>
    %cst_6 = arith.constant dense<0.000000e+00> : vector<64xf32>
    %8 = vector.multi_reduction <add>, %5, %cst_6 [1] : vector<64x8xf32> to vector<64xf32>
    %9 = vector.shape_cast %8 : vector<64xf32> to vector<64x1xf32>
    %10 = arith.addf %7, %9 : vector<64x1xf32>
    %cst_7 = arith.constant 6.250000e-02 : f32
    %11 = vector.broadcast %cst_7 : f32 to vector<64x1xf32>
    %12 = arith.mulf %10, %11 : vector<64x1xf32>
    %13 = vector.broadcast %12 : vector<64x1xf32> to vector<64x8xf32>
    %14 = arith.subf %2, %13 : vector<64x8xf32>
    %15 = vector.broadcast %12 : vector<64x1xf32> to vector<64x8xf32>
    %16 = arith.subf %5, %15 : vector<64x8xf32>
    %17 = arith.mulf %14, %14 : vector<64x8xf32>
    %cst_8 = arith.constant dense<0.000000e+00> : vector<64xf32>
    %18 = vector.multi_reduction <add>, %17, %cst_8 [1] : vector<64x8xf32> to vector<64xf32>
    %19 = vector.shape_cast %18 : vector<64xf32> to vector<64x1xf32>
    %20 = arith.mulf %16, %16 : vector<64x8xf32>
    %cst_9 = arith.constant dense<0.000000e+00> : vector<64xf32>
    %21 = vector.multi_reduction <add>, %20, %cst_9 [1] : vector<64x8xf32> to vector<64xf32>
    %22 = vector.shape_cast %21 : vector<64xf32> to vector<64x1xf32>
    %23 = arith.addf %19, %22 : vector<64x1xf32>
    %cst_10 = arith.constant 6.250000e-02 : f32
    %24 = vector.broadcast %cst_10 : f32 to vector<64x1xf32>
    %25 = arith.mulf %23, %24 : vector<64x1xf32>
    %cst_11 = arith.constant 9.99999974E-6 : f32
    %26 = vector.broadcast %cst_11 : f32 to vector<64x1xf32>
    %27 = arith.addf %25, %26 : vector<64x1xf32>
    %28 = math.rsqrt %27 : vector<64x1xf32>
    %29 = vector.broadcast %28 : vector<64x1xf32> to vector<64x8xf32>
    %30 = arith.mulf %14, %29 : vector<64x8xf32>
    %31 = arith.truncf %30 : vector<64x8xf32> to vector<64x8xbf16>
    %32 = vector.broadcast %28 : vector<64x1xf32> to vector<64x8xf32>
    %33 = arith.mulf %16, %32 : vector<64x8xf32>
    %34 = arith.truncf %33 : vector<64x8xf32> to vector<64x8xbf16>
    %c0_12 = arith.constant 0 : index
    %c0_13 = arith.constant 0 : index
    %c0_14 = arith.constant 0 : index
    %35 = vector.load %arg2[%c0_12, %c0_13, %c0_14] : memref<2x8x8xbf16, #tpu.memory_space<vmem>>, vector<1x8x8xbf16>
    %36 = vector.shape_cast %35 : vector<1x8x8xbf16> to vector<8x8xbf16>
    %cst_15 = arith.constant dense<0.000000e+00> : vector<64x8xf32>
    %37 = tpu.matmul %31, %36, %cst_15 {dimension_numbers = #tpu.dot_dimension_numbers<[1], [0], [0], [1], [0, 0, 1, 1], [], []>} : vector<64x8xbf16>, vector<8x8xbf16>, vector<64x8xf32> -> vector<64x8xf32>
    %c1_16 = arith.constant 1 : index
    %c0_17 = arith.constant 0 : index
    %c0_18 = arith.constant 0 : index
    %38 = vector.load %arg2[%c1_16, %c0_17, %c0_18] : memref<2x8x8xbf16, #tpu.memory_space<vmem>>, vector<1x8x8xbf16>
    %39 = vector.shape_cast %38 : vector<1x8x8xbf16> to vector<8x8xbf16>
    %cst_19 = arith.constant dense<0.000000e+00> : vector<64x8xf32>
    %40 = tpu.matmul %34, %39, %cst_19 {dimension_numbers = #tpu.dot_dimension_numbers<[1], [0], [0], [1], [0, 0, 1, 1], [], []>} : vector<64x8xbf16>, vector<8x8xbf16>, vector<64x8xf32> -> vector<64x8xf32>
    %41 = arith.addf %37, %40 : vector<64x8xf32>
    %c0_20 = arith.constant 0 : index
    %c0_21 = arith.constant 0 : index
    %42 = vector.load %arg3[%c0_20, %c0_21] : memref<1x8xf32, #tpu.memory_space<vmem>>, vector<1x8xf32>
    %43 = vector.broadcast %42 : vector<1x8xf32> to vector<64x8xf32>
    %44 = arith.addf %41, %43 : vector<64x8xf32>
    %c0_22 = arith.constant 0 : index
    %c0_23 = arith.constant 0 : index
    %45 = vector.load %arg4[%c0_22, %c0_23] : memref<64x8xf32, #tpu.memory_space<vmem>>, vector<64x8xf32>
    tpu.vector_store %arg4[%c0_22, %c0_23], %44 {strides = array<i32>} : memref<64x8xf32, #tpu.memory_space<vmem>>, vector<64x8xf32>,
    return
  }
  func.func @transform_0(%arg0: i32) -> (i32, i32, i32, i32) {
    %c0_i32 = arith.constant 0 : i32
    %c0_i32_0 = arith.constant 0 : i32
    %c0_i32_1 = arith.constant 0 : i32
    %c0_i32_2 = arith.constant 0 : i32
    return %arg0, %c0_i32, %c0_i32_0, %c0_i32_1 : i32, i32, i32, i32
  }
  func.func @transform_1(%arg0: i32) -> (i32, i32, i32) {
    %c0_i32 = arith.constant 0 : i32
    %c0_i32_0 = arith.constant 0 : i32
    %c0_i32_1 = arith.constant 0 : i32
    %c0_i32_2 = arith.constant 0 : i32
    return %c0_i32, %c0_i32_0, %c0_i32_1 : i32, i32, i32
  }
  func.func @transform_2(%arg0: i32) -> (i32, i32) {
    %c0_i32 = arith.constant 0 : i32
    %c0_i32_0 = arith.constant 0 : i32
    %c0_i32_1 = arith.constant 0 : i32
    return %c0_i32, %c0_i32_0 : i32, i32
  }
  func.func @transform_3(%arg0: i32) -> (i32, i32) {
    %c0_i32 = arith.constant 0 : i32
    %c0_i32_0 = arith.constant 0 : i32
    return %arg0, %c0_i32 : i32, i32
  }
}

</mosaic_0001>

<bundles_post_ra>
// kernel: tpu_custom_call.1
= control target key start
LH: loop header
LB: loop body
LE: loop exit
PB: predicated region body
PF: predicated region fallthrough
CT: control target
= control target key end

     0   :  { %s762_s12 = smov 0   ;;  %s996_s0 = inlined_call_operand.vmem [shape: f32[16,2,8,8], index: 0, kind: input, shape index: {}]   ;;  %s997_s1 = inlined_call_operand.vmem [shape: bf16[2,8,8], index: 1, kind: input, shape index: {}]   ;;  %s998_s2 = inlined_call_operand.vmem [shape: f32[1,8], index: 2, kind: input, shape index: {}]   ;;  %s999_s3 = inlined_call_operand.vmem [shape: f32[128,8], index: 3, kind: output, shape index: {}]  }
   0x1 LB: > { %s639_s13 = sadd.s32 4294967295, %s740_s12   ;;  %p643_p0 = scmp.ge.s32.totalorder %s740_s12, 1  ;;  %s740_s12 = sphi %s762_s12, %s13_s12  }
   0x2   : > { %p139_p1 = scmp.lt.s32.totalorder %s740_s12, 3 }
   0x4   : > { %p140_p2 = pnand %p643_p0, %p139_p1 }
   0x5   : > { %s644_s14 = sshll.u32 (!%p140_p2), %s639_s13, 3  ;;  %vm195_vm0 = vcmask (!%p140_p2), 64512   ;;  %vm411_vm1 = vcmask (!%p140_p2), 1043456  }
   0x6   : > { %143 = sbr.rel (%p140_p2) target bundleno = 585 (0x249), region = 32  ;;  %p165_p3 = scmp.lt.s32.totalorder (!%p140_p2), %s644_s14, 15 }
   0xd   : > { %s1001_s14 = smov (!%p165_p3, %s644_s14), 15 }
   0xe   : > { %s669_s15 = sshll.u32 %s1001_s14, 4  ;;  %s648_s23 = sshll.u32 %s1001_s14, 3 }
   0xf   : > { %s776_s18 = scalar_lea.vmem %s996_s0, %s669_s15  ;;  %s975_s28 = scalar_lea.vmem %s999_s3, %s648_s23 }
  0x10   : > { %v649_v0 = vld [vmem:[%s776_s18 + $0x8] sm:$0xff]  ;;  %v178_v1 = vld [vmem:[%s776_s18] sm:$0xff]  ;;  %v650_v2 = vld [vmem:[%s776_s18 + $0x18] sm:$0xff] }
  0x11   : > { %v220_v3 = vsel %vm195_vm0, %v649_v0, 0.0  ;;  %v196_v4 = vsel %vm195_vm0, %v178_v1, 0.0  ;;  %v179_v5 = vld [vmem:[%s776_s18 + $0x10] sm:$0xff]  ;;  %v223_v6 = vsel %vm195_vm0, %v650_v2, 0.0  ;;  %v790_v9 = vld [vmem:[%s776_s18 + $0x20] sm:$0xff]  ;;  %v797_v12 = vld [vmem:[%s776_s18 + $0x38] sm:$0xff] }
  0x12   : > { %221 = vadd.xlane.f32.xlu1 %v220_v3  ;;  %197 = vadd.xlane.f32.xlu0 %v196_v4  ;;  %v199_v7 = vsel %vm195_vm0, %v179_v5, 0.0  ;;  %v787_v8 = vld [vmem:[%s776_s18 + $0x30] sm:$0xff]  ;;  %v202_v11 = vsel %vm195_vm0, %v790_v9, 0.0  ;;  %v800_v13 = vld [vmem:[%s776_s18 + $0x28] sm:$0xff]  ;;  %v229_v14 = vsel %vm195_vm0, %v797_v12, 0.0  ;;  %v810_v17 = vld [vmem:[%s776_s18 + $0x40] sm:$0xff] }
  0x13   : > { %v205_v10 = vsel %vm195_vm0, %v787_v8, 0.0  ;;  %v226_v15 = vsel %vm195_vm0, %v800_v13, 0.0  ;;  %v807_v16 = vld [vmem:[%s776_s18 + $0x50] sm:$0xff]  ;;  %v208_v19 = vsel %vm195_vm0, %v810_v17, 0.0  ;;  %v817_v20 = vld [vmem:[%s776_s18 + $0x58] sm:$0xff]  ;;  %v820_v21 = vld [vmem:[%s776_s18 + $0x48] sm:$0xff] }
  0x14   : > { %v211_v18 = vsel %vm195_vm0, %v807_v16, 0.0  ;;  %v235_v22 = vsel %vm195_vm0, %v817_v20, 0.0  ;;  %v232_v23 = vsel %vm195_vm0, %v820_v21, 0.0  ;;  %v827_v24 = vld [vmem:[%s776_s18 + $0x70] sm:$0xff]  ;;  %v830_v25 = vld [vmem:[%s776_s18 + $0x60] sm:$0xff]  ;;  %v837_v28 = vld [vmem:[%s776_s18 + $0x78] sm:$0xff] }
  0x15   : > { %v217_v26 = vsel %vm195_vm0, %v827_v24, 0.0  ;;  %v214_v27 = vsel %vm195_vm0, %v830_v25, 0.0  ;;  %v840_v29 = vld [vmem:[%s776_s18 + $0x68] sm:$0xff]  ;;  %v241_v30 = vsel %vm195_vm0, %v837_v28, 0.0 }
  0x16   : > { %224 = vadd.xlane.f32.xlu1 %v223_v6  ;;  %200 = vadd.xlane.f32.xlu0 %v199_v7  ;;  %v238_v31 = vsel %vm195_vm0, %v840_v29, 0.0 }
  0x1a   : > { %206 = vadd.xlane.f32.xlu1 %v205_v10  ;;  %203 = vadd.xlane.f32.xlu0 %v202_v11 }
  0x1e   : > { %230 = vadd.xlane.f32.xlu1 %v229_v14  ;;  %227 = vadd.xlane.f32.xlu0 %v226_v15 }
  0x22   : > { %212 = vadd.xlane.f32.xlu1 %v211_v18  ;;  %209 = vadd.xlane.f32.xlu0 %v208_v19 }
  0x26   : > { %236 = vadd.xlane.f32.xlu1 %v235_v22  ;;  %233 = vadd.xlane.f32.xlu0 %v232_v23 }
  0x2a   : > { %218 = vadd.xlane.f32.xlu1 %v217_v26  ;;  %215 = vadd.xlane.f32.xlu0 %v214_v27 }
  0x2e   : > { %242 = vadd.xlane.f32.xlu1 %v241_v30  ;;  %239 = vadd.xlane.f32.xlu0 %v238_v31 }
  0x9f   : > { %v222_v32 = vpop.xlane.xlu1 %221  ;;  %v198_v33 = vpop.xlane.xlu0 %197 }
  0xa0   : > { %v244_v34 = vadd.f32 %v222_v32, %v198_v33 }
  0xa2   : > { %v252_v35 = vmul.f32 0.0625, %v244_v34 }
  0xa3   : > { %v225_v36 = vpop.xlane.xlu1 %224  ;;  %v201_v37 = vpop.xlane.xlu0 %200 }
  0xa4   : > { %v846_v38 = vsub.f32 %v178_v1, %v252_v35  ;;  %v848_v39 = vsub.f32 %v649_v0, %v252_v35  ;;  %v245_v40 = vadd.f32 %v225_v36, %v201_v37 }
  0xa6   : > { %v253_v41 = vmul.f32 0.0625, %v245_v40  ;;  %v276_v42 = vmul.f32 %v846_v38, %v846_v38  ;;  %v308_v48 = vmul.f32 %v848_v39, %v848_v39 }
  0xa7   : > { %v207_v43 = vpop.xlane.xlu1 %206  ;;  %v204_v44 = vpop.xlane.xlu0 %203 }
  0xa8   : > { %v852_v45 = vsub.f32 %v179_v5, %v253_v41  ;;  %v854_v46 = vsub.f32 %v650_v2, %v253_v41  ;;  %v284_v47 = vsel %vm195_vm0, %v276_v42, 0.0  ;;  %v316_v55 = vsel %vm195_vm0, %v308_v48, 0.0 }
  0xa9   : > { %285 = vadd.xlane.f32.xlu0 %v284_v47 }
  0xaa   : > { %v277_v49 = vmul.f32 %v852_v45, %v852_v45  ;;  %v309_v52 = vmul.f32 %v854_v46, %v854_v46 }
  0xab   : > { %v231_v50 = vpop.xlane.xlu1 %230  ;;  %v228_v51 = vpop.xlane.xlu0 %227 }
  0xac   : > { %v247_v53 = vadd.f32 %v231_v50, %v207_v43  ;;  %v246_v54 = vadd.f32 %v228_v51, %v204_v44  ;;  %v287_v56 = vsel %vm195_vm0, %v277_v49, 0.0  ;;  %v319_v61 = vsel %vm195_vm0, %v309_v52, 0.0  ;;  %v657_v52 = vld [vmem:[%s997_s1 + $0x4] sm:$0xf] }
  0xad   : > { %317 = vadd.xlane.f32.xlu0 %v316_v55  ;;  %288 = vadd.xlane.f32.xlu1 %v287_v56 }
  0xae   : > { %v255_v57 = vmul.f32 0.0625, %v247_v53  ;;  %v254_v58 = vmul.f32 0.0625, %v246_v54  ;;  %v396_v53 = vld [vmem:[%s997_s1] sm:$0xf]  ;;  %708 = vmatprep.subr.msk.bf16.mxu1 %vm411_vm1, %v657_v52  ;;  %v413_v54 = vsel %vm411_vm1, %v657_v52, 0 }
  0xaf   : > { %v213_v59 = vpop.xlane.xlu1 %212  ;;  %v210_v60 = vpop.xlane.xlu0 %209  ;;  %709 = vmatprep.subr.msk.bf16.mxu0 %vm411_vm1, %v396_v53  ;;  %v493_v55 = vsel %vm411_vm1, %v396_v53, 0  ;;  %681 = vmatpush3.bf16.msra.mxu1 %v413_v54 }
  0xb0   : > { %v867_v62 = vsub.f32 %v787_v8, %v255_v57  ;;  %v870_v63 = vsub.f32 %v797_v12, %v255_v57  ;;  %v873_v0 = vsub.f32 %v790_v9, %v254_v58  ;;  %v876_v1 = vsub.f32 %v800_v13, %v254_v58  ;;  %691 = vmatpush3.bf16.msra.mxu0 %v493_v55 }
  0xb1   : > { %320 = vadd.xlane.f32.xlu1 %v319_v61 }
  0xb2   : > { %v279_v2 = vmul.f32 %v867_v62, %v867_v62  ;;  %v278_v3 = vmul.f32 %v873_v0, %v873_v0  ;;  %v311_v6 = vmul.f32 %v870_v63, %v870_v63  ;;  %v310_v7 = vmul.f32 %v876_v1, %v876_v1 }
  0xb3   : > { %v237_v4 = vpop.xlane.xlu1 %236  ;;  %v234_v5 = vpop.xlane.xlu0 %233 }
  0xb4   : > { %v249_v8 = vadd.f32 %v237_v4, %v213_v59  ;;  %v248_v9 = vadd.f32 %v234_v5, %v210_v60  ;;  %v293_v10 = vsel %vm195_vm0, %v279_v2, 0.0  ;;  %v290_v11 = vsel %vm195_vm0, %v278_v3, 0.0 }
  0xb5   : > { %294 = vadd.xlane.f32.xlu1 %v293_v10  ;;  %291 = vadd.xlane.f32.xlu0 %v290_v11  ;;  %v325_v18 = vsel %vm195_vm0, %v311_v6, 0.0  ;;  %v322_v19 = vsel %vm195_vm0, %v310_v7, 0.0 }
  0xb6   : > { %v257_v12 = vmul.f32 0.0625, %v249_v8  ;;  %v256_v13 = vmul.f32 0.0625, %v248_v9 }
  0xb7   : > { %v219_v14 = vpop.xlane.xlu1 %218  ;;  %v216_v15 = vpop.xlane.xlu0 %215 }
  0xb8   : > { %v891_v22 = vsub.f32 %v807_v16, %v257_v12  ;;  %v894_v23 = vsub.f32 %v817_v20, %v257_v12  ;;  %v897_v26 = vsub.f32 %v810_v17, %v256_v13  ;;  %v900_v27 = vsub.f32 %v820_v21, %v256_v13 }
  0xb9   : > { %326 = vadd.xlane.f32.xlu1 %v325_v18  ;;  %323 = vadd.xlane.f32.xlu0 %v322_v19 }
  0xba   : > { %v281_v30 = vmul.f32 %v891_v22, %v891_v22  ;;  %v280_v31 = vmul.f32 %v897_v26, %v897_v26  ;;  %v313_v20 = vmul.f32 %v894_v23, %v894_v23  ;;  %v312_v17 = vmul.f32 %v900_v27, %v900_v27 }
  0xbb   : > { %v243_v32 = vpop.xlane.xlu1 %242  ;;  %v240_v16 = vpop.xlane.xlu0 %239 }
  0xbc   : > { %v251_v33 = vadd.f32 %v243_v32, %v219_v14  ;;  %v250_v34 = vadd.f32 %v240_v16, %v216_v15  ;;  %v299_v21 = vsel %vm195_vm0, %v281_v30, 0.0  ;;  %v296_v35 = vsel %vm195_vm0, %v280_v31, 0.0 }
  0xbd   : > { %300 = vadd.xlane.f32.xlu1 %v299_v21  ;;  %297 = vadd.xlane.f32.xlu0 %v296_v35  ;;  %v331_v40 = vsel %vm195_vm0, %v313_v20, 0.0  ;;  %v328_v41 = vsel %vm195_vm0, %v312_v17, 0.0 }
  0xbe   : > { %v259_v36 = vmul.f32 0.0625, %v251_v33  ;;  %v258_v37 = vmul.f32 0.0625, %v250_v34 }
  0xc0   : > { %v915_v42 = vsub.f32 %v827_v24, %v259_v36  ;;  %v918_v43 = vsub.f32 %v837_v28, %v259_v36  ;;  %v921_v44 = vsub.f32 %v830_v25, %v258_v37  ;;  %v924_v47 = vsub.f32 %v840_v29, %v258_v37 }
  0xc1   : > { %332 = vadd.xlane.f32.xlu1 %v331_v40  ;;  %329 = vadd.xlane.f32.xlu0 %v328_v41 }
  0xc2   : > { %v283_v48 = vmul.f32 %v915_v42, %v915_v42  ;;  %v282_v49 = vmul.f32 %v921_v44, %v921_v44  ;;  %v315_v28 = vmul.f32 %v918_v43, %v918_v43  ;;  %v314_v25 = vmul.f32 %v924_v47, %v924_v47 }
  0xc4   : > { %v305_v24 = vsel %vm195_vm0, %v283_v48, 0.0  ;;  %v302_v50 = vsel %vm195_vm0, %v282_v49, 0.0  ;;  %v337_v29 = vsel %vm195_vm0, %v315_v28, 0.0  ;;  %v334_v51 = vsel %vm195_vm0, %v314_v25, 0.0 }
  0xc5   : > { %306 = vadd.xlane.f32.xlu1 %v305_v24  ;;  %303 = vadd.xlane.f32.xlu0 %v302_v50 }
  0xc9   : > { %338 = vadd.xlane.f32.xlu1 %v337_v29  ;;  %335 = vadd.xlane.f32.xlu0 %v334_v51 }
 0x136   : > { %v286_v56 = vpop.xlane.xlu0 %285 }
 0x13a   : > { %v289_v57 = vpop.xlane.xlu1 %288  ;;  %v318_v58 = vpop.xlane.xlu0 %317 }
 0x13b   : > { %v340_v59 = vadd.f32 %v318_v58, %v286_v56 }
 0x13d   : > { %v348_v60 = vmul.f32 0.0625, %v340_v59 }
 0x13e   : > { %v321_v61 = vpop.xlane.xlu1 %320 }
 0x13f   : > { %v356_v2 = vadd.f32 1e-05, %v348_v60  ;;  %v341_v3 = vadd.f32 %v321_v61, %v289_v57 }
 0x141   : > { %v349_v4 = vmul.f32 0.0625, %v341_v3  ;;  %718 = vrsqrt.f32 %v356_v2 }
 0x142   : > { %v295_v5 = vpop.xlane.xlu1 %294  ;;  %v292_v6 = vpop.xlane.xlu0 %291 }
 0x143   : > { %v357_v7 = vadd.f32 1e-05, %v349_v4 }
 0x145   : > { %720 = vrsqrt.f32 %v357_v7 }
 0x146   : > { %v327_v8 = vpop.xlane.xlu1 %326  ;;  %v324_v9 = vpop.xlane.xlu0 %323 }
 0x147   : > { %v343_v10 = vadd.f32 %v327_v8, %v295_v5  ;;  %v342_v11 = vadd.f32 %v324_v9, %v292_v6 }
 0x149   : > { %v351_v12 = vmul.f32 0.0625, %v343_v10  ;;  %v350_v13 = vmul.f32 0.0625, %v342_v11  ;;  %v666_v10 = vld [vmem:[%s998_s2] ss:$0 sm:$0xff] }
 0x14a   : > { %v301_v14 = vpop.xlane.xlu1 %300  ;;  %v298_v15 = vpop.xlane.xlu0 %297 }
 0x14b   : > { %v359_v18 = vadd.f32 1e-05, %v351_v12  ;;  %v358_v19 = vadd.f32 1e-05, %v350_v13  ;;  %v719_v30 = vpop.eup %718 }
 0x14c   : > { %v384_v33 = vmul.f32 %v719_v30, %v848_v39  ;;  %v372_v21 = vmul.f32 %v719_v30, %v846_v38 }
 0x14d   : > { %722 = vrsqrt.f32 %v359_v18 }
 0x14e   : > { %724 = vrsqrt.f32 %v358_v19  ;;  %v333_v31 = vpop.xlane.xlu1 %332  ;;  %v330_v32 = vpop.xlane.xlu0 %329 }
 0x14f   : > { %v721_v16 = vpop.eup %720  ;;  %v345_v20 = vadd.f32 %v333_v31, %v301_v14  ;;  %v344_v17 = vadd.f32 %v330_v32, %v298_v15 }
 0x150   : > { %v385_v34 = vmul.f32 %v721_v16, %v854_v46  ;;  %v373_v35 = vmul.f32 %v721_v16, %v852_v45 }
 0x151   : > { %v353_v36 = vmul.f32 0.0625, %v345_v20  ;;  %v352_v37 = vmul.f32 0.0625, %v344_v17 }
 0x152   : > { %v307_v40 = vpop.xlane.xlu1 %306  ;;  %v304_v41 = vpop.xlane.xlu0 %303  ;;  %v392_v48 = vpack.c.bf16 %v385_v34, %v384_v33  ;;  %v380_v49 = vpack.c.bf16 %v373_v35, %v372_v21 }
 0x153   : > { %v361_v24 = vadd.f32 1e-05, %v353_v36  ;;  %v360_v50 = vadd.f32 1e-05, %v352_v37 }
 0x154   : > { %682 = vmatprep.mubr.msk.bf16.mxu1 %vm195_vm0, %v392_v48  ;;  %692 = vmatprep.mubr.msk.bf16.mxu0 %vm195_vm0, %v380_v49 }
 0x155   : > { %726 = vrsqrt.f32 %v361_v24 }
 0x156   : > { %728 = vrsqrt.f32 %v360_v50  ;;  %v339_v39 = vpop.xlane.xlu1 %338  ;;  %v336_v46 = vpop.xlane.xlu0 %335 }
 0x157   : > { %v723_v28 = vpop.eup %722  ;;  %v347_v38 = vadd.f32 %v339_v39, %v307_v40  ;;  %v346_v25 = vadd.f32 %v336_v46, %v304_v41 }
 0x158   : > { %v725_v45 = vpop.eup %724  ;;  %v387_v29 = vmul.f32 %v723_v28, %v870_v63  ;;  %v375_v51 = vmul.f32 %v723_v28, %v867_v62 }
 0x159   : > { %v355_v52 = vmul.f32 0.0625, %v347_v38  ;;  %v354_v53 = vmul.f32 0.0625, %v346_v25  ;;  %v386_v54 = vmul.f32 %v725_v45, %v876_v1  ;;  %v374_v55 = vmul.f32 %v725_v45, %v873_v0 }
 0x15b   : > { %v363_v56 = vadd.f32 1e-05, %v355_v52  ;;  %v362_v57 = vadd.f32 1e-05, %v354_v53  ;;  %v393_v58 = vpack.c.bf16 %v387_v29, %v386_v54  ;;  %v381_v59 = vpack.c.bf16 %v375_v51, %v374_v55 }
 0x15d   : > { %730 = vrsqrt.f32 %v363_v56  ;;  %683 = vmatmul.mubr.msk.bf16.vlgmr.msra.gmra.mrb[0].mxu1 %vm195_vm0, %v393_v58  ;;  %693 = vmatmul.mubr.msk.bf16.vlgmr.msra.gmra.mrb[0].mxu0 %vm195_vm0, %v381_v59 }
 0x15e   : > { %732 = vrsqrt.f32 %v362_v57 }
 0x15f   : > { %v727_v60 = vpop.eup %726 }
 0x160   : > { %v729_v63 = vpop.eup %728  ;;  %v389_v62 = vmul.f32 %v727_v60, %v894_v23  ;;  %v377_v61 = vmul.f32 %v727_v60, %v891_v22 }
 0x161   : > { %v388_v1 = vmul.f32 %v729_v63, %v900_v27  ;;  %v376_v0 = vmul.f32 %v729_v63, %v897_v26 }
 0x163   : > { %v394_v2 = vpack.c.bf16 %v389_v62, %v388_v1  ;;  %v382_v3 = vpack.c.bf16 %v377_v61, %v376_v0 }
 0x165   : > { %686 = vmatprep.mubr.msk.bf16.mxu1 %vm195_vm0, %v394_v2  ;;  %696 = vmatprep.mubr.msk.bf16.mxu0 %vm195_vm0, %v382_v3 }
 0x167   : > { %v731_v4 = vpop.eup %730 }
 0x168   : > { %v733_v5 = vpop.eup %732  ;;  %v391_v6 = vmul.f32 %v731_v4, %v918_v43  ;;  %v379_v7 = vmul.f32 %v731_v4, %v915_v42 }
 0x169   : > { %v390_v23 = vmul.f32 %v733_v5, %v924_v47  ;;  %v378_v22 = vmul.f32 %v733_v5, %v921_v44 }
 0x16b   : > { %v395_v27 = vpack.c.bf16 %v391_v6, %v390_v23  ;;  %v383_v8 = vpack.c.bf16 %v379_v7, %v378_v22 }
 0x16d   : > { %687 = vmatmul.mubr.msk.bf16.gmra.mrb[4].mxu1 %vm195_vm0, %v395_v27  ;;  %697 = vmatmul.mubr.msk.bf16.gmra.mrb[4].mxu0 %vm195_vm0, %v383_v8 }
 0x230   : > { %v684_v26 = vpop.f32.mrb[0].mxu1  ;;  %v694_v9 = vpop.f32.mrb[0].mxu0 }
 0x231   : > { %v538_v43 = vadd.f32 %v694_v9, %v684_v26  ;;  %v449_v11 = vpop.f32.mrb[1].mxu1  ;;  %v529_v42 = vpop.f32.mrb[1].mxu0 }
 0x232   : > { %v530_v44 = vadd.f32 %v529_v42, %v449_v11  ;;  %v685_v47 = vpop.f32.mrb[2].mxu1  ;;  %v695_v12 = vpop.f32.mrb[2].mxu0 }
 0x233   : > { %v569_v13 = vadd.f32 %v666_v10, %v538_v43  ;;  %v541_v14 = vadd.f32 %v695_v12, %v685_v47  ;;  %v452_v15 = vpop.f32.mrb[3].mxu1  ;;  %v532_v18 = vpop.f32.mrb[3].mxu0 }
 0x234   : > { %v567_v19 = vadd.f32 %v666_v10, %v530_v44  ;;  %v533_v30 = vadd.f32 %v532_v18, %v452_v15 }
 0x235   : > { %577 = vst.msk [vmem:[%s975_s28 + $0x10] sm:$0xff] %vm195_vm0, %v569_v13  ;;  %v570_v31 = vadd.f32 %v666_v10, %v541_v14 }
 0x236   : > { %575 = vst.msk [vmem:[%s975_s28] sm:$0xff] %vm195_vm0, %v567_v19  ;;  %v568_v32 = vadd.f32 %v666_v10, %v533_v30 }
 0x237   : > { %578 = vst.msk [vmem:[%s975_s28 + $0x18] sm:$0xff] %vm195_vm0, %v570_v31 }
 0x238   : > { %576 = vst.msk [vmem:[%s975_s28 + $0x8] sm:$0xff] %vm195_vm0, %v568_v32 }
 0x240   : > { %v688_v16 = vpop.f32.mrb[4].mxu1  ;;  %v698_v20 = vpop.f32.mrb[4].mxu0 }
 0x241   : > { %v554_v17 = vadd.f32 %v698_v20, %v688_v16  ;;  %v465_v33 = vpop.f32.mrb[5].mxu1  ;;  %v545_v34 = vpop.f32.mrb[5].mxu0 }
 0x242   : > { %v546_v21 = vadd.f32 %v545_v34, %v465_v33  ;;  %v689_v35 = vpop.f32.mrb[6].mxu1  ;;  %v699_v36 = vpop.f32.mrb[6].mxu0 }
 0x243   : > { %v573_v37 = vadd.f32 %v666_v10, %v554_v17  ;;  %v557_v40 = vadd.f32 %v699_v36, %v689_v35  ;;  %v468_v41 = vpop.f32.mrb[7].mxu1  ;;  %v548_v48 = vpop.f32.mrb[7].mxu0 }
 0x244   : > { %v571_v49 = vadd.f32 %v666_v10, %v546_v21  ;;  %v549_v24 = vadd.f32 %v548_v48, %v468_v41 }
 0x245   : > { %581 = vst.msk [vmem:[%s975_s28 + $0x30] sm:$0xff] %vm195_vm0, %v573_v37  ;;  %v574_v50 = vadd.f32 %v666_v10, %v557_v40 }
 0x246   : > { %579 = vst.msk [vmem:[%s975_s28 + $0x20] sm:$0xff] %vm195_vm0, %v571_v49  ;;  %v572_v39 = vadd.f32 %v666_v10, %v549_v24 }
 0x247   : > { %582 = vst.msk [vmem:[%s975_s28 + $0x38] sm:$0xff] %vm195_vm0, %v574_v50 }
 0x248   : > { %580 = vst.msk [vmem:[%s975_s28 + $0x28] sm:$0xff] %vm195_vm0, %v572_v39 }
 0x249 PF: > { %s13_s12 = sadd.s32 1, %s740_s12  }
 0x24a   : > { %p10_p4 = scmp.ge.s32.totalorder %s13_s12, 4  }
 0x24c   :  { %12 = sbr.rel (!%p10_p4) target bundleno = 1 (0x1), region = 64 }

</bundles_post_ra>
